<compile_context>
chip_gen: v7x
topology: tpu7x:2x2x1
jax: 0.10.0
libtpu: 0.0.40
codegen_flags: <defaults>
</compile_context>

<pallas_src>
import functools
import numpy as np

import jax
import jax.numpy as jnp
from jax import lax
from jax.experimental import pallas as pl
from jax.experimental.pallas import tpu as pltpu

BN_EPS = 1e-5
LEAKY_SLOPE = 0.1
LANES = 128

# ---------------------------------------------------------------------------
# Synthetic Darknet config (replaces parse_model_config(cfg_path)).
# module indices (excluding 'net'):
#  0 conv 3x3/1  4->8    16x16
#  1 conv 3x3/2  8->16    8x8
#  2 conv 1x1/1 16->16    8x8
#  3 shortcut from=-2 (adds layer 1)
#  4 conv 1x1/1 16->18 (linear, bias)  -> yolo head 1
#  5 yolo
#  6 route -3 (layer 3 output)
#  7 conv 1x1/1 16->8
#  8 upsample x2          16x16
#  9 route -1,-9 (concat upsample with layer 0) -> 16 ch
# 10 conv 3x3/1 16->16
# 11 conv 1x1/1 16->18 (linear, bias)  -> yolo head 2
# 12 yolo
# ---------------------------------------------------------------------------
MODULE_DEFS = [
    {"type": "net"},
    {"type": "convolutional", "batch_normalize": 1, "filters": 8,  "size": 3, "stride": 1, "pad": 1, "activation": "leaky"},
    {"type": "convolutional", "batch_normalize": 1, "filters": 16, "size": 3, "stride": 2, "pad": 1, "activation": "leaky"},
    {"type": "convolutional", "batch_normalize": 1, "filters": 16, "size": 1, "stride": 1, "pad": 0, "activation": "leaky"},
    {"type": "shortcut", "from": "-2", "activation": "linear"},
    {"type": "convolutional", "batch_normalize": 0, "filters": 18, "size": 1, "stride": 1, "pad": 0, "activation": "linear"},
    {"type": "yolo"},
    {"type": "route", "layers": "-3"},
    {"type": "convolutional", "batch_normalize": 1, "filters": 8,  "size": 1, "stride": 1, "pad": 0, "activation": "leaky"},
    {"type": "upsample", "stride": 2},
    {"type": "route", "layers": "-1,-9"},
    {"type": "convolutional", "batch_normalize": 1, "filters": 16, "size": 3, "stride": 1, "pad": 1, "activation": "leaky"},
    {"type": "convolutional", "batch_normalize": 0, "filters": 18, "size": 1, "stride": 1, "pad": 0, "activation": "linear"},
    {"type": "yolo"},
]


def _round_up(v, m):
    return -(-v // m) * m


@functools.lru_cache(maxsize=None)
def _tensorcores_per_chip():
    """2 for v7x (dual TC per chip), 1 for v5e/v6e (and as safe fallback)."""
    try:
        kind = jax.devices()[0].device_kind.lower()
    except Exception:
        return 1
    return 2 if "v7" in kind else 1


def _m_layout(M):
    """Padded row count + M-tile. Single grid step on single-TC chips; 2-way
    'parallel' split only on v7x so both TensorCores get work."""
    if _tensorcores_per_chip() >= 2 and M >= 64:
        Mp = _round_up(M, 32)
        return Mp, Mp // 2
    Mp = _round_up(M, 16)
    return Mp, Mp


def _kp_for(K):
    """Lane-pad K to 128 only when the zero-column overhead is small."""
    if K % 128 == 0:
        return K
    if K % 128 > 64:
        return _round_up(K, 128)
    return _round_up(K, 16)   # bf16 sublane alignment for the weight matrix


# ---------------------------------------------------------------------------
# Activation wrapper: lane-dense padded (Mp, Cpad) kernel output + lazy NHWC view
# ---------------------------------------------------------------------------
class Act:
    __slots__ = ("padded", "_nhwc", "N", "H", "W", "C")

    def __init__(self, padded=None, nhwc=None, N=None, H=None, W=None, C=None):
        self.padded = padded          # (Mp, Cpad) bf16/f32, rows = flattened N*H*W
        self._nhwc = nhwc
        self.N, self.H, self.W, self.C = N, H, W, C

    def nhwc(self, dtype=None):
        if self._nhwc is None:
            M = self.N * self.H * self.W
            self._nhwc = self.padded[:M, :self.C].reshape(
                self.N, self.H, self.W, self.C)
        x = self._nhwc
        if dtype is not None and x.dtype != dtype:
            x = x.astype(dtype)
        return x


def _as_act(x):
    return _concat_acts(x) if isinstance(x, list) else x


def _concat_acts(acts):
    if len(acts) == 1:
        return acts[0]
    a0 = acts[0]
    cat = jnp.concatenate([a.nhwc(jnp.bfloat16) for a in acts], axis=-1)
    return Act(nhwc=cat, N=a0.N, H=a0.H, W=a0.W, C=sum(a.C for a in acts))


# ---------------------------------------------------------------------------
# Pallas kernels
# ---------------------------------------------------------------------------
def _conv_mm_kernel(p_ref, w_ref, b_ref, o_ref, *, slope):
    """Fused im2col-matmul (bf16 in, f32 acc); BN scale folded into weights;
    shift add + leaky ReLU epilogue."""
    acc = jnp.dot(p_ref[...], w_ref[...], preferred_element_type=jnp.float32)
    y = acc + b_ref[...]
    if slope != 1.0:                      # trace-time branch: no-op for linear layers
        y = jnp.where(y >= 0.0, y, y * slope)
    o_ref[...] = y.astype(o_ref.dtype)


def _conv_mm_res_kernel(p_ref, w_ref, b_ref, r_ref, o_ref, *, slope):
    """Same as above, plus a fused residual (shortcut) add."""
    acc = jnp.dot(p_ref[...], w_ref[...], preferred_element_type=jnp.float32)
    y = acc + b_ref[...]
    if slope != 1.0:
        y = jnp.where(y >= 0.0, y, y * slope)
    o_ref[...] = (y + r_ref[...].astype(jnp.float32)).astype(o_ref.dtype)


def _add_kernel(a_ref, b_ref, o_ref):
    o_ref[...] = a_ref[...] + b_ref[...]


# ---------------------------------------------------------------------------
# im2col (pure data-movement glue, bf16, patch features ordered (KH, KW, Cin))
# ---------------------------------------------------------------------------
def _im2col(sources, KH, KW, stride, pad):
    """sources: list of NHWC bf16 arrays (same N,H,W); channels are concatenated
    per window position, so a multi-input route never materializes the
    concatenated activation."""
    N, H, W = sources[0].shape[:3]
    Hout = (H + 2 * pad - KH) // stride + 1
    Wout = (W + 2 * pad - KW) // stride + 1
    padded = [jnp.pad(s, ((0, 0), (pad, pad), (pad, pad), (0, 0))) if pad else s
              for s in sources]
    cols = []
    for kh in range(KH):
        for kw in range(KW):
            chunks = []
            for xp in padded:
                Cin = xp.shape[-1]
                sl = lax.slice(
                    xp,
                    (0, kh, kw, 0),
                    (N, kh + (Hout - 1) * stride + 1,
                     kw + (Wout - 1) * stride + 1, Cin),
                    (1, stride, stride, 1),
                )  # (N, Hout, Wout, Cin)
                chunks.append(sl)
            cols.append(chunks[0] if len(chunks) == 1
                        else jnp.concatenate(chunks, axis=-1))
    pat = jnp.stack(cols, axis=3)          # (N, Hout, Wout, KH*KW, Ctot) — (kh,kw,cin) order
    Ctot = pat.shape[-1]
    M = N * Hout * Wout
    K = KH * KW * Ctot
    return pat.reshape(M, K), N, Hout, Wout


# ---------------------------------------------------------------------------
# Fused conv + BN/bias + activation (+ optional residual) via one Pallas matmul
# ---------------------------------------------------------------------------
def conv_bn_act_pallas(sources, weight, scale, shift, stride, pad, slope,
                       residual=None, out_f32=False):
    """sources: list of Act inputs (route order). weight: (Cout,Cin,KH,KW)."""
    Cout, Cin_w, KH, KW = weight.shape
    is_1x1 = (KH == 1 and KW == 1 and stride == 1 and pad == 0)
    src0 = sources[0]
    N, H, W = src0.N, src0.H, src0.W

    if is_1x1 and len(sources) == 1 and src0.padded is not None:
        # Fast path: the patch matrix is literally the producer's padded,
        # lane-dense bf16 output. No im2col, no pad, no cast, no HBM copy.
        Hout, Wout = H, W
        M = N * Hout * Wout
        K = src0.C
        pat = src0.padded
        if pat.dtype != jnp.bfloat16:
            pat = pat.astype(jnp.bfloat16)
        Mp, tile_m = _m_layout(M)
        if pat.shape[0] != Mp:            # defensive; layouts normally match
            pat = (jnp.pad(pat, ((0, Mp - pat.shape[0]), (0, 0)))
                   if pat.shape[0] < Mp else pat[:Mp])
        Kp = pat.shape[1]
    elif is_1x1 and len(sources) == 1:
        Hout, Wout = H, W
        M = N * Hout * Wout
        K = src0.C
        Kp = _kp_for(K)
        Mp, tile_m = _m_layout(M)
        pat = src0.nhwc(jnp.bfloat16).reshape(M, K)
        pat = jnp.pad(pat, ((0, Mp - M), (0, Kp - K)))
    else:
        srcs = [s.nhwc(jnp.bfloat16) for s in sources]
        pat, N, Hout, Wout = _im2col(srcs, KH, KW, stride, pad)
        M, K = pat.shape
        Kp = _kp_for(K)
        Mp, tile_m = _m_layout(M)
        pat = jnp.pad(pat, ((0, Mp - M), (0, Kp - K)))

    Cpad = _round_up(Cout, LANES)
    out_dtype = jnp.float32 if out_f32 else jnp.bfloat16

    # weight -> (K, Cout) ordered (kh, kw, cin) to match the patch feature order;
    # fold the BN scale into the weights before the bf16 cast (drops one operand
    # DMA and one VPU multiply per output vreg from the kernel epilogue).
    Kw = KH * KW * Cin_w
    w2d = jnp.transpose(weight, (2, 3, 1, 0)).reshape(Kw, Cout)
    w2d = (w2d * scale[None, :]).astype(jnp.bfloat16)
    w2d = jnp.pad(w2d, ((0, Kp - Kw), (0, Cpad - Cout)))
    shift2 = jnp.pad(shift.reshape(1, Cout).astype(jnp.float32),
                     ((0, 0), (0, Cpad - Cout)))

    in_specs = [
        pl.BlockSpec((tile_m, Kp), lambda i: (i, 0)),
        pl.BlockSpec((Kp, Cpad), lambda i: (0, 0)),
        pl.BlockSpec((1, Cpad), lambda i: (0, 0)),
    ]
    args = [pat, w2d, shift2]

    res_bytes = 0
    if residual is not None:
        if (residual.padded is not None
                and residual.padded.shape == (Mp, Cpad)):
            # Reuse the producer's already-padded lane-dense output directly.
            res2 = residual.padded
        else:
            r = residual.nhwc(jnp.bfloat16).reshape(M, residual.C)
            res2 = jnp.pad(r, ((0, Mp - M), (0, Cpad - residual.C)))
        in_specs.append(pl.BlockSpec((tile_m, Cpad), lambda i: (i, 0)))
        args.append(res2)
        res_bytes = res2.size * res2.dtype.itemsize
        kernel = functools.partial(_conv_mm_res_kernel, slope=float(slope))
    else:
        kernel = functools.partial(_conv_mm_kernel, slope=float(slope))

    flops = 2 * Mp * Kp * Cpad
    bytes_accessed = (pat.size * pat.dtype.itemsize
                      + w2d.size * 2 + shift2.size * 4
                      + Mp * Cpad * (4 if out_f32 else 2) + res_bytes)

    # TODO(synk): at real Darknet channel counts add a K grid axis ("arbitrary",
    # reduction last) with an f32 VMEM accumulator so the single weight block
    # never exceeds v7x's scoped VMEM; unnecessary at these toy sizes.
    out = pl.pallas_call(
        kernel,
        out_shape=jax.ShapeDtypeStruct((Mp, Cpad), out_dtype),
        grid=(Mp // tile_m,),
        in_specs=in_specs,
        out_specs=pl.BlockSpec((tile_m, Cpad), lambda i: (i, 0)),
        compiler_params=pltpu.CompilerParams(
            dimension_semantics=("parallel",)),
        cost_estimate=pl.CostEstimate(flops=flops, transcendentals=0,
                                      bytes_accessed=int(bytes_accessed)),
    )(*args)

    return Act(padded=out, N=N, H=Hout, W=Wout, C=Cout)


# ---------------------------------------------------------------------------
# Lane-dense, tiled residual add (fallback for non-fusible shortcuts)
# ---------------------------------------------------------------------------
def add_pallas(a, b):
    shp = a.shape
    b = b.astype(a.dtype)
    E = int(np.prod(shp))
    rows = -(-E // LANES)
    tile_r = 256 if rows > 256 else max(16, _round_up(rows, 16))
    rows_p = _round_up(rows, tile_r)
    pad_e = rows_p * LANES - E
    a2 = jnp.pad(a.reshape(-1), (0, pad_e)).reshape(rows_p, LANES)
    b2 = jnp.pad(b.reshape(-1), (0, pad_e)).reshape(rows_p, LANES)
    out = pl.pallas_call(
        _add_kernel,
        out_shape=jax.ShapeDtypeStruct((rows_p, LANES), a.dtype),
        grid=(rows_p // tile_r,),
        in_specs=[pl.BlockSpec((tile_r, LANES), lambda i: (i, 0)),
                  pl.BlockSpec((tile_r, LANES), lambda i: (i, 0))],
        out_specs=pl.BlockSpec((tile_r, LANES), lambda i: (i, 0)),
        compiler_params=pltpu.CompilerParams(
            dimension_semantics=("parallel",)),
        cost_estimate=pl.CostEstimate(
            flops=rows_p * LANES, transcendentals=0,
            bytes_accessed=3 * rows_p * LANES * a.dtype.itemsize),
    )(a2, b2)
    return out.reshape(-1)[:E].reshape(shp)


# ---------------------------------------------------------------------------
# Parameter construction (deterministic; replaces load_weights)
# ---------------------------------------------------------------------------
def build_params(module_defs, in_channels, key):
    params = []
    out_ch = []
    cur = in_channels
    for md in module_defs:
        t = md["type"]
        if t == "net":
            continue
        if t == "convolutional":
            cout = md["filters"]
            k = md["size"]
            key, k1, k2, k3, k4, k5 = jax.random.split(key, 6)
            w = 0.1 * jax.random.normal(k1, (cout, cur, k, k), jnp.float32)
            if md.get("batch_normalize", 0):
                gamma = 1.0 + 0.1 * jax.random.normal(k2, (cout,), jnp.float32)
                beta = 0.1 * jax.random.normal(k3, (cout,), jnp.float32)
                mean = 0.1 * jax.random.normal(k4, (cout,), jnp.float32)
                var = 0.5 + jax.random.uniform(k5, (cout,), dtype=jnp.float32)
                scale = gamma / jnp.sqrt(var + BN_EPS)
                shift = beta - mean * scale
            else:
                bias = 0.1 * jax.random.normal(k2, (cout,), jnp.float32)
                scale = jnp.ones((cout,), jnp.float32)
                shift = bias
            slope = LEAKY_SLOPE if md["activation"] == "leaky" else 1.0
            params.append({"w": w, "scale": scale, "shift": shift, "slope": slope})
            cur = cout
        elif t == "route":
            layers = [int(v) for v in md["layers"].split(",")]
            cur = sum(out_ch[l] for l in layers)
        # upsample / shortcut / yolo keep channel count unchanged
        out_ch.append(cur)
    return params


# ---------------------------------------------------------------------------
# Forward pass (mirrors Darknet.forward control flow)
# ---------------------------------------------------------------------------
def _referenced_layers(mdefs):
    """Absolute layer indices read by any route/shortcut (for safe fusion)."""
    refs = set()
    for idx, md in enumerate(mdefs):
        if md["type"] == "route":
            for l in md["layers"].split(","):
                l = int(l)
                refs.add(l if l >= 0 else idx + l)
        elif md["type"] == "shortcut":
            f = int(md["from"])
            refs.add(f if f >= 0 else idx + f)
    return refs


def darknet_forward(x_nchw, module_defs, params):
    x_nhwc = jnp.transpose(x_nchw, (0, 2, 3, 1))  # NCHW -> NHWC
    N, H, W, C = x_nhwc.shape
    x = Act(nhwc=x_nhwc, N=N, H=H, W=W, C=C)
    mdefs = [md for md in module_defs if md["type"] != "net"]
    referenced = _referenced_layers(mdefs)
    n = len(mdefs)

    outputs = []
    layer_outputs = []
    pi = 0
    shortcut_fused = False
    for i, md in enumerate(mdefs):
        t = md["type"]
        if t == "convolutional":
            p = params[pi]
            pi += 1
            sources = x if isinstance(x, list) else [x]
            residual = None
            # Fuse an immediately-following shortcut into this conv kernel when
            # the pure (pre-add) conv output is never read by a later
            # route/shortcut; layer_outputs[i] then holds the post-add value.
            if (i + 1 < n and mdefs[i + 1]["type"] == "shortcut"
                    and i not in referenced):
                assert i not in referenced, "fused shortcut would hide a referenced layer"
                f = int(mdefs[i + 1]["from"])
                ridx = f if f >= 0 else (i + 1) + f
                residual = _as_act(layer_outputs[ridx])
                shortcut_fused = True
            out_f32 = (i + 1 < n and mdefs[i + 1]["type"] == "yolo")
            x = conv_bn_act_pallas(sources, p["w"], p["scale"], p["shift"],
                                   md["stride"], md["pad"], p["slope"],
                                   residual=residual, out_f32=out_f32)
        elif t == "upsample":
            # TODO(synk): nearest upsample could be folded into the consuming
            # conv's im2col gather (index h//s, w//s); at these sizes it is
            # pure data-movement glue, done as one broadcast instead of 2 repeats.
            a = _as_act(x)
            s = md["stride"]
            xs = a.nhwc(jnp.bfloat16)
            up = jnp.broadcast_to(xs[:, :, None, :, None, :],
                                  (a.N, a.H, s, a.W, s, a.C)
                                  ).reshape(a.N, a.H * s, a.W * s, a.C)
            x = Act(nhwc=up, N=a.N, H=a.H * s, W=a.W * s, C=a.C)
        elif t == "route":
            layers = [int(v) for v in md["layers"].split(",")]
            srcs = [layer_outputs[l] for l in layers]
            if len(srcs) == 1:
                x = _as_act(srcs[0])
            elif (i not in referenced and i + 1 < n
                  and mdefs[i + 1]["type"] == "convolutional"):
                # Defer the concat: fused into the next conv's im2col.
                x = [_as_act(s) for s in srcs]
            else:
                x = _concat_acts([_as_act(s) for s in srcs])
        elif t == "shortcut":
            if shortcut_fused:
                shortcut_fused = False      # already applied inside the conv kernel
            else:
                a = _as_act(x)
                b = _as_act(layer_outputs[int(md["from"])])
                summed = add_pallas(a.nhwc(), b.nhwc())
                x = Act(nhwc=summed, N=a.N, H=a.H, W=a.W, C=a.C)
        elif t == "yolo":
            outputs.append(_as_act(x))
        layer_outputs.append(x)
    # back to NCHW like the PyTorch module (f32 only at the yolo heads)
    return tuple(jnp.transpose(o.nhwc(jnp.float32), (0, 3, 1, 2))
                 for o in outputs)


# ---------------------------------------------------------------------------
# Pure-JAX f32 reference (lax.conv) used only for verification
# ---------------------------------------------------------------------------
def darknet_forward_ref(x_nchw, module_defs, params):
    x = x_nchw
    outputs = []
    layer_outputs = []
    pi = 0
    for md in module_defs:
        t = md["type"]
        if t == "net":
            continue
        if t == "convolutional":
            p = params[pi]
            pi += 1
            pad = md["pad"]
            y = lax.conv_general_dilated(
                x, p["w"], (md["stride"], md["stride"]),
                [(pad, pad), (pad, pad)],
                dimension_numbers=("NCHW", "OIHW", "NCHW"))
            y = y * p["scale"][None, :, None, None] + p["shift"][None, :, None, None]
            x = jnp.where(y >= 0.0, y, y * p["slope"])
        elif t == "upsample":
            s = md["stride"]
            x = jnp.repeat(jnp.repeat(x, s, axis=2), s, axis=3)
        elif t == "route":
            layers = [int(v) for v in md["layers"].split(",")]
            if len(layers) == 1:
                x = layer_outputs[layers[0]]
            else:
                x = jnp.concatenate([layer_outputs[l] for l in layers], axis=1)
        elif t == "shortcut":
            x = x + layer_outputs[int(md["from"])]
        elif t == "yolo":
            outputs.append(x)
        layer_outputs.append(x)
    return tuple(outputs)


# TODO(synk): cfg/weight-file parsing (parse_model_config / load_weights) has no
# Pallas equivalent; a synthetic in-script config + deterministic init is used.

if __name__ == "__main__":
    key = jax.random.PRNGKey(0)
    key, xk = jax.random.split(key)
    x = jax.random.normal(xk, (2, 4, 16, 16), jnp.float32)  # NCHW like PyTorch

    params = build_params(MODULE_DEFS, in_channels=4, key=key)

    outs = darknet_forward(x, MODULE_DEFS, params)
    outs = jax.block_until_ready(outs)

    refs = darknet_forward_ref(x, MODULE_DEFS, params)
    refs = jax.block_until_ready(refs)

    assert len(outs) == 2
    for o, r in zip(outs, refs):
        assert o.shape == r.shape, (o.shape, r.shape)
        np.testing.assert_allclose(np.asarray(o), np.asarray(r),
                                   rtol=5e-2, atol=5e-2)

    print("KERNEL_OK")
</pallas_src>

<mosaic_0001>
module attributes {stable_mosaic.version = 11 : i64} {
  func.func @_conv_mm_kernel(%arg0: i32, %arg1: memref<512x48xbf16, #tpu.memory_space<vmem>>, %arg2: memref<48x128xbf16, #tpu.memory_space<vmem>>, %arg3: memref<1x128xf32, #tpu.memory_space<vmem>>, %arg4: memref<512x128xbf16, #tpu.memory_space<vmem>>) attributes {dimension_semantics = [#tpu.dimension_semantics<parallel>], iteration_bounds = array<i64: 1>, scalar_prefetch = 0 : i64, scratch_operands = 0 : i64, tpu.core_type = #tpu.core_type<tc>, window_params = [{transform_indices = @transform_0, window_bounds = array<i64: 512, 48>}, {pipeline_mode = #tpu.pipeline_mode<synchronous>, transform_indices = @transform_1, window_bounds = array<i64: 48, 128>}, {pipeline_mode = #tpu.pipeline_mode<synchronous>, transform_indices = @transform_2, window_bounds = array<i64: 1, 128>}, {transform_indices = @transform_3, window_bounds = array<i64: 512, 128>}]} {
    %c0 = arith.constant 0 : index
    %c0_0 = arith.constant 0 : index
    %0 = vector.load %arg1[%c0, %c0_0] : memref<512x48xbf16, #tpu.memory_space<vmem>>, vector<512x48xbf16>
    %c0_1 = arith.constant 0 : index
    %c0_2 = arith.constant 0 : index
    %1 = vector.load %arg2[%c0_1, %c0_2] : memref<48x128xbf16, #tpu.memory_space<vmem>>, vector<48x128xbf16>
    %cst = arith.constant dense<0.000000e+00> : vector<512x128xf32>
    %2 = tpu.matmul %0, %1, %cst {dimension_numbers = #tpu.dot_dimension_numbers<[1], [0], [0], [1], [0, 0, 1, 1], [], []>} : vector<512x48xbf16>, vector<48x128xbf16>, vector<512x128xf32> -> vector<512x128xf32>
    %c0_3 = arith.constant 0 : index
    %c0_4 = arith.constant 0 : index
    %3 = vector.load %arg3[%c0_3, %c0_4] : memref<1x128xf32, #tpu.memory_space<vmem>>, vector<1x128xf32>
    %4 = vector.broadcast %3 : vector<1x128xf32> to vector<512x128xf32>
    %5 = arith.addf %2, %4 : vector<512x128xf32>
    %cst_5 = arith.constant 0.000000e+00 : f32
    %6 = vector.broadcast %cst_5 : f32 to vector<512x128xf32>
    %7 = arith.cmpf oge, %5, %6 : vector<512x128xf32>
    %cst_6 = arith.constant 1.000000e-01 : f32
    %8 = vector.broadcast %cst_6 : f32 to vector<512x128xf32>
    %9 = arith.mulf %5, %8 : vector<512x128xf32>
    %10 = arith.select %7, %5, %9 : vector<512x128xi1>, vector<512x128xf32>
    %11 = arith.truncf %10 : vector<512x128xf32> to vector<512x128xbf16>
    %c0_7 = arith.constant 0 : index
    %c0_8 = arith.constant 0 : index
    %12 = vector.load %arg4[%c0_7, %c0_8] : memref<512x128xbf16, #tpu.memory_space<vmem>>, vector<512x128xbf16>
    tpu.vector_store %arg4[%c0_7, %c0_8], %11 {strides = array<i32>} : memref<512x128xbf16, #tpu.memory_space<vmem>>, vector<512x128xbf16>,
    return
  }
  func.func @transform_0(%arg0: i32) -> (i32, i32) {
    %c0_i32 = arith.constant 0 : i32
    %c0_i32_0 = arith.constant 0 : i32
    return %arg0, %c0_i32 : i32, i32
  }
  func.func @transform_1(%arg0: i32) -> (i32, i32) {
    %c0_i32 = arith.constant 0 : i32
    %c0_i32_0 = arith.constant 0 : i32
    %c0_i32_1 = arith.constant 0 : i32
    return %c0_i32, %c0_i32_0 : i32, i32
  }
  func.func @transform_2(%arg0: i32) -> (i32, i32) {
    %c0_i32 = arith.constant 0 : i32
    %c0_i32_0 = arith.constant 0 : i32
    %c0_i32_1 = arith.constant 0 : i32
    return %c0_i32, %c0_i32_0 : i32, i32
  }
  func.func @transform_3(%arg0: i32) -> (i32, i32) {
    %c0_i32 = arith.constant 0 : i32
    %c0_i32_0 = arith.constant 0 : i32
    return %arg0, %c0_i32 : i32, i32
  }
}

</mosaic_0001>

<bundles_post_ra>
// kernel: tpu_custom_call.1
= control target key start
LH: loop header
LB: loop body
LE: loop exit
PB: predicated region body
PF: predicated region fallthrough
CT: control target
= control target key end

     0   :  { %vm271_vm0 = vcmask 392192   ;;  %s1996_s0 = inlined_call_operand.vmem [shape: bf16[512,48], index: 0, kind: input, shape index: {}]   ;;  %s1997_s1 = inlined_call_operand.vmem [shape: bf16[48,128], index: 1, kind: input, shape index: {}]   ;;  %s1998_s2 = inlined_call_operand.vmem [shape: f32[1,128], index: 2, kind: input, shape index: {}]   ;;  %s1999_s3 = inlined_call_operand.hbm [shape: bf16[512,128], index: 3, kind: output, shape index: {}]  }
   0x1   :  { %v1686_v0 = vld [vmem:[%s1997_s1] sm:$0xff]   ;;  %v1687_v1 = vld [vmem:[%s1997_s1 + $0x8] sm:$0xff]   ;;  %v1688_v2 = vld [vmem:[%s1997_s1 + $0x10] sm:$0xff]  }
   0x2   :  { %1607 = vmatprep.subr.bf16.mxu0 %v1686_v0  ;;  %1677 = vmatprep.subr.bf16.mxu1 %v1686_v0  ;;  %v1689_v3 = vld [vmem:[%s1996_s0] sm:$0xff]   ;;  %v1691_v5 = vld [vmem:[%s1996_s0 + $0x8] sm:$0xff]   ;;  %v1693_v7 = vld [vmem:[%s1996_s0 + $0x10] sm:$0xff]  }
   0x3   :  { %1608 = vmatpush3.bf16.msra.mxu0 %v1686_v0  ;;  %1680 = vmatpush3.bf16.msra.mxu1 %v1686_v0  ;;  %v1690_v4 = vld [vmem:[%s1996_s0 + $0x80] sm:$0xff]   ;;  %v1692_v6 = vld [vmem:[%s1996_s0 + $0x88] sm:$0xff]   ;;  %v1694_v8 = vld [vmem:[%s1996_s0 + $0x90] sm:$0xff]  }
   0x4   :  { %1609 = vmatprep.subr.bf16.mxu0 %v1687_v1  ;;  %1678 = vmatprep.subr.bf16.mxu1 %v1687_v1  ;;  %v1695_v9 = vld [vmem:[%s1996_s0 + $0x18] sm:$0xff]   ;;  %v1697_v11 = vld [vmem:[%s1996_s0 + $0x20] sm:$0xff]   ;;  %v1699_v13 = vld [vmem:[%s1996_s0 + $0x28] sm:$0xff]  }
   0x5   :  { %1613 = vmatprep.mubr.msk.bf16.mxu0 %vm271_vm0, %v1689_v3  ;;  %1645 = vmatprep.mubr.msk.bf16.mxu1 %vm271_vm0, %v1690_v4  ;;  %v1696_v10 = vld [vmem:[%s1996_s0 + $0x98] sm:$0xff]   ;;  %v1698_v12 = vld [vmem:[%s1996_s0 + $0xa0] sm:$0xff]   ;;  %v1700_v14 = vld [vmem:[%s1996_s0 + $0xa8] sm:$0xff]  }
   0x6   :  { %v1701_v15 = vld [vmem:[%s1996_s0 + $0x30] sm:$0xff]   ;;  %v1703_v17 = vld [vmem:[%s1996_s0 + $0x38] sm:$0xff]   ;;  %v1705_v19 = vld [vmem:[%s1996_s0 + $0x40] sm:$0xff]  }
   0x7   :  { %1610 = vmatpush3.bf16.msra.mxu0 %v1687_v1  ;;  %1681 = vmatpush3.bf16.msra.mxu1 %v1687_v1  ;;  %v1702_v16 = vld [vmem:[%s1996_s0 + $0xb0] sm:$0xff]   ;;  %v1704_v18 = vld [vmem:[%s1996_s0 + $0xb8] sm:$0xff]   ;;  %v1706_v20 = vld [vmem:[%s1996_s0 + $0xc0] sm:$0xff]  }
   0x8   :  { %1611 = vmatprep.subr.bf16.mxu0 %v1688_v2  ;;  %1679 = vmatprep.subr.bf16.mxu1 %v1688_v2 }
   0xb   :  { %1612 = vmatpush3.bf16.msra.mxu0 %v1688_v2  ;;  %1682 = vmatpush3.bf16.msra.mxu1 %v1688_v2 }
   0xe   :  { %1614 = vmatmul.mubr.msk.bf16.vlgmr.msra.gmra.mrb[0].mxu0 %vm271_vm0, %v1691_v5  ;;  %1646 = vmatmul.mubr.msk.bf16.vlgmr.msra.gmra.mrb[0].mxu1 %vm271_vm0, %v1692_v6 }
   0xf   :  { %1617 = vmatprep.mubr.msk.bf16.mxu0 %vm271_vm0, %v1693_v7  ;;  %1649 = vmatprep.mubr.msk.bf16.mxu1 %vm271_vm0, %v1694_v8 }
  0x16   :  { %1618 = vmatmul.mubr.msk.bf16.gmra.mrb[4].mxu0 %vm271_vm0, %v1695_v9  ;;  %1650 = vmatmul.mubr.msk.bf16.gmra.mrb[4].mxu1 %vm271_vm0, %v1696_v10 }
  0x17   :  { %1621 = vmatprep.mubr.msk.bf16.mxu0 %vm271_vm0, %v1697_v11  ;;  %1653 = vmatprep.mubr.msk.bf16.mxu1 %vm271_vm0, %v1698_v12 }
  0x1e   :  { %1622 = vmatmul.mubr.msk.bf16.gmra.mrb[8].mxu0 %vm271_vm0, %v1699_v13  ;;  %1654 = vmatmul.mubr.msk.bf16.gmra.mrb[8].mxu1 %vm271_vm0, %v1700_v14 }
  0x1f   :  { %1625 = vmatprep.mubr.msk.bf16.mxu0 %vm271_vm0, %v1701_v15  ;;  %1657 = vmatprep.mubr.msk.bf16.mxu1 %vm271_vm0, %v1702_v16 }
  0x20   :  { %8 = vsyncpa [#allocation3], 0  ;;  %v1707_v21 = vld [vmem:[%s1996_s0 + $0x48] sm:$0xff]   ;;  %v1709_v23 = vld [vmem:[%s1996_s0 + $0x50] sm:$0xff]  }
  0x21   :  { %v1708_v22 = vld [vmem:[%s1996_s0 + $0xc8] sm:$0xff]   ;;  %v1710_v24 = vld [vmem:[%s1996_s0 + $0xd0] sm:$0xff]   ;;  %v1711_v25 = vld [vmem:[%s1996_s0 + $0x58] sm:$0xff]  }
  0x22   :  { %v1712_v26 = vld [vmem:[%s1996_s0 + $0xd8] sm:$0xff]   ;;  %v1713_v27 = vld [vmem:[%s1996_s0 + $0x60] sm:$0xff]   ;;  %v1715_v29 = vld [vmem:[%s1996_s0 + $0x68] sm:$0xff]  }
  0x23   :  { %v1714_v28 = vld [vmem:[%s1996_s0 + $0xe0] sm:$0xff]   ;;  %v1716_v30 = vld [vmem:[%s1996_s0 + $0xe8] sm:$0xff]   ;;  %v1717_v31 = vld [vmem:[%s1996_s0 + $0x70] sm:$0xff]  }
  0x24   :  { %v1718_v32 = vld [vmem:[%s1996_s0 + $0xf0] sm:$0xff]   ;;  %v1719_v33 = vld [vmem:[%s1996_s0 + $0x78] sm:$0xff]   ;;  %v1908_v35 = vld [vmem:[%s1998_s2] ss:$0 sm:$0xff] }
  0x25   :  { %v1720_v34 = vld [vmem:[%s1996_s0 + $0xf8] sm:$0xff]   ;;  %s1745_s0 = smov [#allocation2]  }
  0x26   :  { %1626 = vmatmul.mubr.msk.bf16.gmra.mrb[12].mxu0 %vm271_vm0, %v1703_v17  ;;  %1658 = vmatmul.mubr.msk.bf16.gmra.mrb[12].mxu1 %vm271_vm0, %v1704_v18  ;;  %s1174_s2 = sshll.u32 %s1745_s0, 4  ;;  %s1175_s2 = int_to_ptr.vmem [resolvable:$true] %s1174_s2 }
  0x27   :  { %1629 = vmatprep.mubr.msk.bf16.mxu0 %vm271_vm0, %v1705_v19  ;;  %1661 = vmatprep.mubr.msk.bf16.mxu1 %vm271_vm0, %v1706_v20  ;;  %s1721_s27 = scalar_lea.vmem %s1175_s2, 4096  ;;  %p1726_p1 = scmp.lt.s32.totalorder %s1175_s2, %s1175_s2 }
  0x28   :  { %p1722_p0 = scmp.ne.s32.totalorder %s1175_s2, %s1721_s27  ;;  %p1727_p2 = scmp.lt.s32.totalorder %s1721_s27, %s1721_s27 }
  0x2a   :  { %p1728_p3 = por %p1727_p2, %p1726_p1 }
  0x2c   :  { %p1729_p4 = pnand %p1728_p3, %p1722_p0 }
  0x2e   :  { %1630 = vmatmul.mubr.msk.bf16.gmra.mrb[16].mxu0 %vm271_vm0, %v1707_v21  ;;  %1662 = vmatmul.mubr.msk.bf16.gmra.mrb[16].mxu1 %vm271_vm0, %v1708_v22 }
  0x2f   :  { %1633 = vmatprep.mubr.msk.bf16.mxu0 %vm271_vm0, %v1709_v23  ;;  %1665 = vmatprep.mubr.msk.bf16.mxu1 %vm271_vm0, %v1710_v24 }
  0x36   :  { %1634 = vmatmul.mubr.msk.bf16.gmra.mrb[20].mxu0 %vm271_vm0, %v1711_v25  ;;  %1666 = vmatmul.mubr.msk.bf16.gmra.mrb[20].mxu1 %vm271_vm0, %v1712_v26 }
  0x37   :  { %1637 = vmatprep.mubr.msk.bf16.mxu0 %vm271_vm0, %v1713_v27  ;;  %1669 = vmatprep.mubr.msk.bf16.mxu1 %vm271_vm0, %v1714_v28 }
  0x3e   :  { %1638 = vmatmul.mubr.msk.bf16.gmra.mrb[24].mxu0 %vm271_vm0, %v1715_v29  ;;  %1670 = vmatmul.mubr.msk.bf16.gmra.mrb[24].mxu1 %vm271_vm0, %v1716_v30 }
  0x3f   :  { %1641 = vmatprep.mubr.msk.bf16.mxu0 %vm271_vm0, %v1717_v31  ;;  %1673 = vmatprep.mubr.msk.bf16.mxu1 %vm271_vm0, %v1718_v32 }
  0x46   :  { %1642 = vmatmul.mubr.msk.bf16.gmra.mrb[28].mxu0 %vm271_vm0, %v1719_v33  ;;  %1674 = vmatmul.mubr.msk.bf16.gmra.mrb[28].mxu1 %vm271_vm0, %v1720_v34 }
  0xe1   :  { %v1615_v36 = vpop.f32.mrb[0].mxu0  ;;  %v1647_v37 = vpop.f32.mrb[0].mxu1 }
  0xe2   :  { %v411_v38 = vadd.f32 %v1615_v36, %v1908_v35  ;;  %v539_v39 = vadd.f32 %v1647_v37, %v1908_v35  ;;  %v402_v40 = vpop.f32.mrb[1].mxu0  ;;  %v530_v41 = vpop.f32.mrb[1].mxu1 }
  0xe3   :  { %v403_v42 = vadd.f32 %v1908_v35, %v402_v40  ;;  %v531_v43 = vadd.f32 %v1908_v35, %v530_v41  ;;  %v1616_v44 = vpop.f32.mrb[2].mxu0  ;;  %v1648_v45 = vpop.f32.mrb[2].mxu1 }
  0xe4   :  { %vm659_vm1 = vcmp.ge.f32.partialorder %v411_v38, 0.0  ;;  %v723_v46 = vmul.f32 0.1, %v411_v38  ;;  %vm691_vm2 = vcmp.ge.f32.partialorder %v539_v39, 0.0  ;;  %v755_v47 = vmul.f32 0.1, %v539_v39 }
  0xe5   :  { %vm657_vm3 = vcmp.ge.f32.partialorder %v403_v42, 0.0  ;;  %v721_v48 = vmul.f32 0.1, %v403_v42  ;;  %vm689_vm4 = vcmp.ge.f32.partialorder %v531_v43, 0.0  ;;  %v753_v49 = vmul.f32 0.1, %v531_v43 }
  0xe6   :  { %v414_v50 = vadd.f32 %v1616_v44, %v1908_v35  ;;  %v542_v51 = vadd.f32 %v1648_v45, %v1908_v35  ;;  %v405_v52 = vpop.f32.mrb[3].mxu0  ;;  %v533_v53 = vpop.f32.mrb[3].mxu1  ;;  %v787_v54 = vsel %vm659_vm1, %v411_v38, %v723_v46  ;;  %v819_v55 = vsel %vm691_vm2, %v539_v39, %v755_v47 }
  0xe7   :  { %v406_v56 = vadd.f32 %v1908_v35, %v405_v52  ;;  %v534_v57 = vadd.f32 %v1908_v35, %v533_v53  ;;  %v785_v62 = vsel %vm657_vm3, %v403_v42, %v721_v48  ;;  %v817_v63 = vsel %vm689_vm4, %v531_v43, %v753_v49 }
  0xe8   :  { %vm660_vm5 = vcmp.ge.f32.partialorder %v414_v50, 0.0  ;;  %v724_v58 = vmul.f32 0.1, %v414_v50  ;;  %vm692_vm6 = vcmp.ge.f32.partialorder %v542_v51, 0.0  ;;  %v756_v59 = vmul.f32 0.1, %v542_v51 }
  0xe9   :  { %vm658_vm7 = vcmp.ge.f32.partialorder %v406_v56, 0.0  ;;  %v722_v60 = vmul.f32 0.1, %v406_v56  ;;  %vm690_vm8 = vcmp.ge.f32.partialorder %v534_v57, 0.0  ;;  %v754_v61 = vmul.f32 0.1, %v534_v57 }
  0xea   :  { %v788_v0 = vsel %vm660_vm5, %v414_v50, %v724_v58  ;;  %v820_v1 = vsel %vm692_vm6, %v542_v51, %v756_v59  ;;  %v1619_v2 = vpop.f32.mrb[4].mxu0  ;;  %v1651_v3 = vpop.f32.mrb[4].mxu1 }
  0xeb   :  { %v1389_v4 = vpack.c.bf16 %v788_v0, %v787_v54  ;;  %v1469_v5 = vpack.c.bf16 %v820_v1, %v819_v55  ;;  %v786_v6 = vsel %vm658_vm7, %v406_v56, %v722_v60  ;;  %v818_v7 = vsel %vm690_vm8, %v534_v57, %v754_v61  ;;  %v418_v8 = vpop.f32.mrb[5].mxu0  ;;  %v546_v9 = vpop.f32.mrb[5].mxu1 }
  0xec   :  { %v1384_v10 = vpack.c.bf16 %v786_v6, %v785_v62  ;;  %v1464_v11 = vpack.c.bf16 %v818_v7, %v817_v63  ;;  %v427_v12 = vadd.f32 %v1619_v2, %v1908_v35  ;;  %v555_v13 = vadd.f32 %v1651_v3, %v1908_v35  ;;  %v1620_v14 = vpop.f32.mrb[6].mxu0  ;;  %v1652_v15 = vpop.f32.mrb[6].mxu1 }
  0xed   :  { %1541 = vst [vmem:[#allocation2 + $0x8] sm:$0xff] %v1389_v4   ;;  %1557 = vst [vmem:[#allocation2 + $0x88] sm:$0xff] %v1469_v5   ;;  %v419_v16 = vadd.f32 %v1908_v35, %v418_v8  ;;  %v547_v17 = vadd.f32 %v1908_v35, %v546_v9  ;;  %v430_v18 = vadd.f32 %v1620_v14, %v1908_v35  ;;  %v421_v20 = vpop.f32.mrb[7].mxu0  ;;  %v549_v21 = vpop.f32.mrb[7].mxu1 }
  0xee   :  { %v558_v19 = vadd.f32 %v1652_v15, %v1908_v35  ;;  %1385 = vst [vmem:[#allocation2] sm:$0xff] %v1384_v10   ;;  %1556 = vst [vmem:[#allocation2 + $0x80] sm:$0xff] %v1464_v11   ;;  %vm663_vm9 = vcmp.ge.f32.partialorder %v427_v12, 0.0  ;;  %v727_v22 = vmul.f32 0.1, %v427_v12  ;;  %vm695_vm10 = vcmp.ge.f32.partialorder %v555_v13, 0.0 }
  0xef   :  { %v759_v23 = vmul.f32 0.1, %v555_v13  ;;  %vm661_vm11 = vcmp.ge.f32.partialorder %v419_v16, 0.0  ;;  %v725_v24 = vmul.f32 0.1, %v419_v16  ;;  %vm693_vm12 = vcmp.ge.f32.partialorder %v547_v17, 0.0 }
  0xf0   :  { %v757_v25 = vmul.f32 0.1, %v547_v17  ;;  %v791_v26 = vsel %vm663_vm9, %v427_v12, %v727_v22  ;;  %vm664_vm13 = vcmp.ge.f32.partialorder %v430_v18, 0.0  ;;  %v728_v28 = vmul.f32 0.1, %v430_v18 }
  0xf1   :  { %v823_v27 = vsel %vm695_vm10, %v555_v13, %v759_v23  ;;  %v789_v29 = vsel %vm661_vm11, %v419_v16, %v725_v24  ;;  %vm696_vm14 = vcmp.ge.f32.partialorder %v558_v19, 0.0  ;;  %v760_v31 = vmul.f32 0.1, %v558_v19  ;;  %v1623_v32 = vpop.f32.mrb[8].mxu0  ;;  %v1655_v33 = vpop.f32.mrb[8].mxu1 }
  0xf2   :  { %v821_v30 = vsel %vm693_vm12, %v547_v17, %v757_v25  ;;  %v792_v34 = vsel %vm664_vm13, %v430_v18, %v728_v28  ;;  %v422_v36 = vadd.f32 %v1908_v35, %v421_v20  ;;  %v550_v37 = vadd.f32 %v1908_v35, %v549_v21  ;;  %v434_v39 = vpop.f32.mrb[9].mxu0  ;;  %v562_v40 = vpop.f32.mrb[9].mxu1 }
  0xf3   :  { %v443_v38 = vadd.f32 %v1623_v32, %v1908_v35  ;;  %v1399_v41 = vpack.c.bf16 %v792_v34, %v791_v26  ;;  %v824_v42 = vsel %vm696_vm14, %v558_v19, %v760_v31  ;;  %v571_v43 = vadd.f32 %v1655_v33, %v1908_v35  ;;  %v1624_v45 = vpop.f32.mrb[10].mxu0  ;;  %v1656_v46 = vpop.f32.mrb[10].mxu1 }
  0xf4   :  { %v435_v44 = vadd.f32 %v1908_v35, %v434_v39  ;;  %v1479_v47 = vpack.c.bf16 %v824_v42, %v823_v27  ;;  %vm662_vm15 = vcmp.ge.f32.partialorder %v422_v36, 0.0  ;;  %v726_v48 = vmul.f32 0.1, %v422_v36  ;;  %v437_v49 = vpop.f32.mrb[11].mxu0  ;;  %v565_v50 = vpop.f32.mrb[11].mxu1 }
  0xf5   :  { %vm694_vm0 = vcmp.ge.f32.partialorder %v550_v37, 0.0  ;;  %1543 = vst [vmem:[#allocation2 + $0x18] sm:$0xff] %v1399_v41   ;;  %v758_v51 = vmul.f32 0.1, %v550_v37  ;;  %vm667_vm1 = vcmp.ge.f32.partialorder %v443_v38, 0.0  ;;  %vm699_vm2 = vcmp.ge.f32.partialorder %v571_v43, 0.0 }
  0xf6   :  { %v731_v52 = vmul.f32 0.1, %v443_v38  ;;  %1559 = vst [vmem:[#allocation2 + $0x98] sm:$0xff] %v1479_v47   ;;  %v790_v53 = vsel %vm662_vm15, %v422_v36, %v726_v48  ;;  %v763_v54 = vmul.f32 0.1, %v571_v43  ;;  %vm665_vm3 = vcmp.ge.f32.partialorder %v435_v44, 0.0 }
  0xf7   :  { %v729_v55 = vmul.f32 0.1, %v435_v44  ;;  %v1394_v56 = vpack.c.bf16 %v790_v53, %v789_v29  ;;  %v822_v57 = vsel %vm694_vm0, %v550_v37, %v758_v51  ;;  %v563_v59 = vadd.f32 %v1908_v35, %v562_v40 }
  0xf8   :  { %v795_v58 = vsel %vm667_vm1, %v443_v38, %v731_v52  ;;  %v1474_v60 = vpack.c.bf16 %v822_v57, %v821_v30  ;;  %v827_v61 = vsel %vm699_vm2, %v571_v43, %v763_v54  ;;  %v446_v63 = vadd.f32 %v1624_v45, %v1908_v35 }
  0xf9   :  { %v793_v62 = vsel %vm665_vm3, %v435_v44, %v729_v55  ;;  %1542 = vst [vmem:[#allocation2 + $0x10] sm:$0xff] %v1394_v56   ;;  %vm697_vm4 = vcmp.ge.f32.partialorder %v563_v59, 0.0  ;;  %v761_v0 = vmul.f32 0.1, %v563_v59  ;;  %v574_v1 = vadd.f32 %v1656_v46, %v1908_v35  ;;  %v1627_v3 = vpop.f32.mrb[12].mxu0  ;;  %v1659_v4 = vpop.f32.mrb[12].mxu1 }
  0xfa   :  { %v438_v2 = vadd.f32 %v1908_v35, %v437_v49  ;;  %1558 = vst [vmem:[#allocation2 + $0x90] sm:$0xff] %v1474_v60   ;;  %vm668_vm5 = vcmp.ge.f32.partialorder %v446_v63, 0.0  ;;  %v732_v5 = vmul.f32 0.1, %v446_v63  ;;  %v566_v6 = vadd.f32 %v1908_v35, %v565_v50  ;;  %v450_v8 = vpop.f32.mrb[13].mxu0  ;;  %v578_v9 = vpop.f32.mrb[13].mxu1 }
  0xfb   :  { %v459_v7 = vadd.f32 %v1627_v3, %v1908_v35  ;;  %v825_v10 = vsel %vm697_vm4, %v563_v59, %v761_v0  ;;  %vm700_vm6 = vcmp.ge.f32.partialorder %v574_v1, 0.0  ;;  %v764_v11 = vmul.f32 0.1, %v574_v1  ;;  %v1628_v12 = vpop.f32.mrb[14].mxu0  ;;  %v1660_v13 = vpop.f32.mrb[14].mxu1 }
  0xfc   :  { %vm666_vm7 = vcmp.ge.f32.partialorder %v438_v2, 0.0  ;;  %v796_v14 = vsel %vm668_vm5, %v446_v63, %v732_v5  ;;  %v730_v15 = vmul.f32 0.1, %v438_v2  ;;  %vm698_vm8 = vcmp.ge.f32.partialorder %v566_v6, 0.0  ;;  %v453_v17 = vpop.f32.mrb[15].mxu0  ;;  %v581_v21 = vpop.f32.mrb[15].mxu1 }
  0xfd   :  { %v762_v16 = vmul.f32 0.1, %v566_v6  ;;  %v1409_v18 = vpack.c.bf16 %v796_v14, %v795_v58  ;;  %v828_v19 = vsel %vm700_vm6, %v574_v1, %v764_v11  ;;  %vm671_vm9 = vcmp.ge.f32.partialorder %v459_v7, 0.0 }
  0xfe   :  { %v735_v20 = vmul.f32 0.1, %v459_v7  ;;  %v1489_v22 = vpack.c.bf16 %v828_v19, %v827_v61  ;;  %v794_v23 = vsel %vm666_vm7, %v438_v2, %v730_v15  ;;  %v587_v25 = vadd.f32 %v1659_v4, %v1908_v35 }
  0xff   :  { %v826_v24 = vsel %vm698_vm8, %v566_v6, %v762_v16  ;;  %1545 = vst [vmem:[#allocation2 + $0x28] sm:$0xff] %v1409_v18   ;;  %v1404_v26 = vpack.c.bf16 %v794_v23, %v793_v62  ;;  %v451_v29 = vadd.f32 %v1908_v35, %v450_v8  ;;  %v579_v31 = vadd.f32 %v1908_v35, %v578_v9 }
 0x100   :  { %v1484_v27 = vpack.c.bf16 %v826_v24, %v825_v10  ;;  %v799_v28 = vsel %vm671_vm9, %v459_v7, %v735_v20  ;;  %1561 = vst [vmem:[#allocation2 + $0xa8] sm:$0xff] %v1489_v22   ;;  %vm703_vm10 = vcmp.ge.f32.partialorder %v587_v25, 0.0  ;;  %v767_v30 = vmul.f32 0.1, %v587_v25 }
 0x101   :  { %v462_v32 = vadd.f32 %v1628_v12, %v1908_v35  ;;  %1544 = vst [vmem:[#allocation2 + $0x20] sm:$0xff] %v1404_v26   ;;  %vm669_vm11 = vcmp.ge.f32.partialorder %v451_v29, 0.0  ;;  %v733_v33 = vmul.f32 0.1, %v451_v29  ;;  %v590_v34 = vadd.f32 %v1660_v13, %v1908_v35  ;;  %v1631_v37 = vpop.f32.mrb[16].mxu0  ;;  %v1663_v38 = vpop.f32.mrb[16].mxu1 }
 0x102   :  { %1560 = vst [vmem:[#allocation2 + $0xa0] sm:$0xff] %v1484_v27   ;;  %v454_v36 = vadd.f32 %v1908_v35, %v453_v17  ;;  %v831_v39 = vsel %vm703_vm10, %v587_v25, %v767_v30  ;;  %vm701_vm12 = vcmp.ge.f32.partialorder %v579_v31, 0.0  ;;  %v765_v40 = vmul.f32 0.1, %v579_v31  ;;  %v466_v41 = vpop.f32.mrb[17].mxu0  ;;  %v594_v42 = vpop.f32.mrb[17].mxu1 }
 0x103   :  { %vm672_vm13 = vcmp.ge.f32.partialorder %v462_v32, 0.0  ;;  %v797_v43 = vsel %vm669_vm11, %v451_v29, %v733_v33  ;;  %v736_v44 = vmul.f32 0.1, %v462_v32  ;;  %vm704_vm14 = vcmp.ge.f32.partialorder %v590_v34, 0.0  ;;  %v1632_v46 = vpop.f32.mrb[18].mxu0  ;;  %v1664_v50 = vpop.f32.mrb[18].mxu1 }
 0x104   :  { %v768_v45 = vmul.f32 0.1, %v590_v34  ;;  %v829_v47 = vsel %vm701_vm12, %v579_v31, %v765_v40  ;;  %vm670_vm15 = vcmp.ge.f32.partialorder %v454_v36, 0.0  ;;  %v734_v48 = vmul.f32 0.1, %v454_v36  ;;  %v469_v51 = vpop.f32.mrb[19].mxu0 }
 0x105   :  { %v582_v49 = vadd.f32 %v1908_v35, %v581_v21  ;;  %v800_v52 = vsel %vm672_vm13, %v462_v32, %v736_v44  ;;  %v475_v54 = vadd.f32 %v1631_v37, %v1908_v35  ;;  %v603_v55 = vadd.f32 %v1663_v38, %v1908_v35  ;;  %v597_v56 = vpop.f32.mrb[19].mxu1 }
 0x106   :  { %v832_v53 = vsel %vm704_vm14, %v590_v34, %v768_v45  ;;  %v1419_v57 = vpack.c.bf16 %v800_v52, %v799_v28  ;;  %v798_v59 = vsel %vm670_vm15, %v454_v36, %v734_v48  ;;  %v467_v0 = vadd.f32 %v1908_v35, %v466_v41 }
 0x107   :  { %v1499_v58 = vpack.c.bf16 %v832_v53, %v831_v39  ;;  %vm702_vm0 = vcmp.ge.f32.partialorder %v582_v49, 0.0  ;;  %v1414_v60 = vpack.c.bf16 %v798_v59, %v797_v43  ;;  %v766_v61 = vmul.f32 0.1, %v582_v49 }
 0x108   :  { %vm675_vm1 = vcmp.ge.f32.partialorder %v475_v54, 0.0  ;;  %v739_v62 = vmul.f32 0.1, %v475_v54  ;;  %1547 = vst [vmem:[#allocation2 + $0x38] sm:$0xff] %v1419_v57   ;;  %vm707_vm2 = vcmp.ge.f32.partialorder %v603_v55, 0.0  ;;  %v595_v1 = vadd.f32 %v1908_v35, %v594_v42 }
 0x109   :  { %1563 = vst [vmem:[#allocation2 + $0xb8] sm:$0xff] %v1499_v58   ;;  %v771_v63 = vmul.f32 0.1, %v603_v55  ;;  %1546 = vst [vmem:[#allocation2 + $0x30] sm:$0xff] %v1414_v60   ;;  %v830_v2 = vsel %vm702_vm0, %v582_v49, %v766_v61  ;;  %v478_v4 = vadd.f32 %v1632_v46, %v1908_v35  ;;  %v606_v5 = vadd.f32 %v1664_v50, %v1908_v35  ;;  %v1635_v6 = vpop.f32.mrb[20].mxu0  ;;  %v1667_v7 = vpop.f32.mrb[20].mxu1 }
 0x10a   :  { %v803_v3 = vsel %vm675_vm1, %v475_v54, %v739_v62  ;;  %v1494_v8 = vpack.c.bf16 %v830_v2, %v829_v47  ;;  %vm673_vm3 = vcmp.ge.f32.partialorder %v467_v0, 0.0  ;;  %v737_v10 = vmul.f32 0.1, %v467_v0  ;;  %v482_v11 = vpop.f32.mrb[21].mxu0  ;;  %v610_v12 = vpop.f32.mrb[21].mxu1 }
 0x10b   :  { %v835_v9 = vsel %vm707_vm2, %v603_v55, %v771_v63  ;;  %vm705_vm4 = vcmp.ge.f32.partialorder %v595_v1, 0.0  ;;  %v769_v13 = vmul.f32 0.1, %v595_v1  ;;  %vm676_vm5 = vcmp.ge.f32.partialorder %v478_v4, 0.0  ;;  %v1636_v18 = vpop.f32.mrb[22].mxu0  ;;  %v1668_v19 = vpop.f32.mrb[22].mxu1 }
 0x10c   :  { %v740_v14 = vmul.f32 0.1, %v478_v4  ;;  %1562 = vst [vmem:[#allocation2 + $0xb0] sm:$0xff] %v1494_v8   ;;  %v801_v15 = vsel %vm673_vm3, %v467_v0, %v737_v10  ;;  %vm708_vm6 = vcmp.ge.f32.partialorder %v606_v5, 0.0  ;;  %v772_v16 = vmul.f32 0.1, %v606_v5 }
 0x10d   :  { %v470_v17 = vadd.f32 %v1908_v35, %v469_v51  ;;  %v833_v20 = vsel %vm705_vm4, %v595_v1, %v769_v13  ;;  %v598_v22 = vadd.f32 %v1908_v35, %v597_v56  ;;  %v491_v23 = vadd.f32 %v1635_v6, %v1908_v35  ;;  %v485_v24 = vpop.f32.mrb[23].mxu0  ;;  %v613_v25 = vpop.f32.mrb[23].mxu1 }
 0x10e   :  { %v804_v21 = vsel %vm676_vm5, %v478_v4, %v740_v14  ;;  %v836_v27 = vsel %vm708_vm6, %v606_v5, %v772_v16  ;;  %v619_v33 = vadd.f32 %v1667_v7, %v1908_v35  ;;  %v483_v34 = vadd.f32 %v1908_v35, %v482_v11 }
 0x10f   :  { %v1429_v26 = vpack.c.bf16 %v804_v21, %v803_v3  ;;  %vm674_vm7 = vcmp.ge.f32.partialorder %v470_v17, 0.0  ;;  %v738_v28 = vmul.f32 0.1, %v470_v17  ;;  %v1509_v29 = vpack.c.bf16 %v836_v27, %v835_v9 }
 0x110   :  { %vm706_vm8 = vcmp.ge.f32.partialorder %v598_v22, 0.0  ;;  %v770_v30 = vmul.f32 0.1, %v598_v22  ;;  %vm679_vm9 = vcmp.ge.f32.partialorder %v491_v23, 0.0  ;;  %v743_v32 = vmul.f32 0.1, %v491_v23 }
 0x111   :  { %1549 = vst [vmem:[#allocation2 + $0x48] sm:$0xff] %v1429_v26   ;;  %v802_v31 = vsel %vm674_vm7, %v470_v17, %v738_v28  ;;  %1565 = vst [vmem:[#allocation2 + $0xc8] sm:$0xff] %v1509_v29   ;;  %v611_v38 = vadd.f32 %v1908_v35, %v610_v12  ;;  %v494_v39 = vadd.f32 %v1636_v18, %v1908_v35  ;;  %v1639_v40 = vpop.f32.mrb[24].mxu0  ;;  %v1671_v41 = vpop.f32.mrb[24].mxu1  ;;  %vm711_vm10 = vcmp.ge.f32.partialorder %v619_v33, 0.0 }
 0x112   :  { %v1424_v36 = vpack.c.bf16 %v802_v31, %v801_v15  ;;  %v834_v37 = vsel %vm706_vm8, %v598_v22, %v770_v30  ;;  %v775_v43 = vmul.f32 0.1, %v619_v33  ;;  %v498_v44 = vpop.f32.mrb[25].mxu0  ;;  %v626_v45 = vpop.f32.mrb[25].mxu1  ;;  %v807_v46 = vsel %vm679_vm9, %v491_v23, %v743_v32 }
 0x113   :  { %v1504_v42 = vpack.c.bf16 %v834_v37, %v833_v20  ;;  %vm677_vm11 = vcmp.ge.f32.partialorder %v483_v34, 0.0  ;;  %v741_v47 = vmul.f32 0.1, %v483_v34  ;;  %v773_v48 = vmul.f32 0.1, %v611_v38  ;;  %v1640_v51 = vpop.f32.mrb[26].mxu0 }
 0x114   :  { %1548 = vst [vmem:[#allocation2 + $0x40] sm:$0xff] %v1424_v36   ;;  %vm709_vm12 = vcmp.ge.f32.partialorder %v611_v38, 0.0  ;;  %vm680_vm13 = vcmp.ge.f32.partialorder %v494_v39, 0.0  ;;  %v744_v49 = vmul.f32 0.1, %v494_v39  ;;  %v622_v50 = vadd.f32 %v1668_v19, %v1908_v35  ;;  %v1672_v52 = vpop.f32.mrb[26].mxu1 }
 0x115   :  { %1564 = vst [vmem:[#allocation2 + $0xc0] sm:$0xff] %v1504_v42   ;;  %v839_v53 = vsel %vm711_vm10, %v619_v33, %v775_v43  ;;  %v805_v54 = vsel %vm677_vm11, %v483_v34, %v741_v47  ;;  %v486_v55 = vadd.f32 %v1908_v35, %v485_v24  ;;  %v614_v56 = vadd.f32 %v1908_v35, %v613_v25  ;;  %v501_v57 = vpop.f32.mrb[27].mxu0  ;;  %v629_v58 = vpop.f32.mrb[27].mxu1 }
 0x116   :  { %v808_v59 = vsel %vm680_vm13, %v494_v39, %v744_v49  ;;  %vm712_vm14 = vcmp.ge.f32.partialorder %v622_v50, 0.0  ;;  %v776_v60 = vmul.f32 0.1, %v622_v50  ;;  %v507_v61 = vadd.f32 %v1639_v40, %v1908_v35 }
 0x117   :  { %v1439_v62 = vpack.c.bf16 %v808_v59, %v807_v46  ;;  %vm678_vm15 = vcmp.ge.f32.partialorder %v486_v55, 0.0  ;;  %v742_v63 = vmul.f32 0.1, %v486_v55  ;;  %vm710_vm0 = vcmp.ge.f32.partialorder %v614_v56, 0.0 }
 0x118   :  { %v840_v0 = vsel %vm712_vm14, %v622_v50, %v776_v60  ;;  %v774_v1 = vmul.f32 0.1, %v614_v56  ;;  %vm683_vm1 = vcmp.ge.f32.partialorder %v507_v61, 0.0  ;;  %v747_v2 = vmul.f32 0.1, %v507_v61 }
 0x119   :  { %1551 = vst [vmem:[#allocation2 + $0x58] sm:$0xff] %v1439_v62   ;;  %v1519_v3 = vpack.c.bf16 %v840_v0, %v839_v53  ;;  %v806_v4 = vsel %vm678_vm15, %v486_v55, %v742_v63  ;;  %v635_v5 = vadd.f32 %v1671_v41, %v1908_v35  ;;  %v499_v6 = vadd.f32 %v1908_v35, %v498_v44  ;;  %v1643_v7 = vpop.f32.mrb[28].mxu0  ;;  %v1675_v8 = vpop.f32.mrb[28].mxu1 }
 0x11a   :  { %v837_v9 = vsel %vm709_vm12, %v611_v38, %v773_v48  ;;  %v1434_v10 = vpack.c.bf16 %v806_v4, %v805_v54  ;;  %v838_v11 = vsel %vm710_vm0, %v614_v56, %v774_v1  ;;  %v627_v12 = vadd.f32 %v1908_v35, %v626_v45  ;;  %v514_v13 = vpop.f32.mrb[29].mxu0  ;;  %v642_v14 = vpop.f32.mrb[29].mxu1 }
 0x11b   :  { %1567 = vst [vmem:[#allocation2 + $0xd8] sm:$0xff] %v1519_v3   ;;  %v1514_v15 = vpack.c.bf16 %v838_v11, %v837_v9  ;;  %vm715_vm2 = vcmp.ge.f32.partialorder %v635_v5, 0.0  ;;  %v779_v16 = vmul.f32 0.1, %v635_v5  ;;  %vm681_vm3 = vcmp.ge.f32.partialorder %v499_v6, 0.0  ;;  %v1644_v17 = vpop.f32.mrb[30].mxu0 }
 0x11c   :  { %v1676_v18 = vpop.f32.mrb[30].mxu1  ;;  %1550 = vst [vmem:[#allocation2 + $0x50] sm:$0xff] %v1434_v10   ;;  %v811_v19 = vsel %vm683_vm1, %v507_v61, %v747_v2  ;;  %v745_v20 = vmul.f32 0.1, %v499_v6  ;;  %vm713_vm4 = vcmp.ge.f32.partialorder %v627_v12, 0.0  ;;  %v510_v21 = vadd.f32 %v1640_v51, %v1908_v35  ;;  %v517_v22 = vpop.f32.mrb[31].mxu0 }
 0x11d   :  { %1566 = vst [vmem:[#allocation2 + $0xd0] sm:$0xff] %v1514_v15   ;;  %v777_v23 = vmul.f32 0.1, %v627_v12  ;;  %v638_v24 = vadd.f32 %v1672_v52, %v1908_v35  ;;  %v502_v25 = vadd.f32 %v1908_v35, %v501_v57  ;;  %v630_v26 = vadd.f32 %v1908_v35, %v629_v58  ;;  %v645_v27 = vpop.f32.mrb[31].mxu1 }
 0x11e   :  { %v843_v28 = vsel %vm715_vm2, %v635_v5, %v779_v16  ;;  %v809_v29 = vsel %vm681_vm3, %v499_v6, %v745_v20  ;;  %vm684_vm5 = vcmp.ge.f32.partialorder %v510_v21, 0.0  ;;  %v748_v30 = vmul.f32 0.1, %v510_v21 }
 0x11f   :  { %vm716_vm6 = vcmp.ge.f32.partialorder %v638_v24, 0.0  ;;  %v780_v31 = vmul.f32 0.1, %v638_v24  ;;  %vm682_vm7 = vcmp.ge.f32.partialorder %v502_v25, 0.0  ;;  %v746_v32 = vmul.f32 0.1, %v502_v25 }
 0x120   :  { %v812_v33 = vsel %vm684_vm5, %v510_v21, %v748_v30  ;;  %vm714_vm8 = vcmp.ge.f32.partialorder %v630_v26, 0.0  ;;  %v778_v34 = vmul.f32 0.1, %v630_v26  ;;  %v523_v36 = vadd.f32 %v1643_v7, %v1908_v35 }
 0x121   :  { %v1449_v37 = vpack.c.bf16 %v812_v33, %v811_v19  ;;  %v844_v38 = vsel %vm716_vm6, %v638_v24, %v780_v31  ;;  %v810_v39 = vsel %vm682_vm7, %v502_v25, %v746_v32  ;;  %v651_v40 = vadd.f32 %v1675_v8, %v1908_v35 }
 0x122   :  { %v841_v41 = vsel %vm713_vm4, %v627_v12, %v777_v23  ;;  %v1529_v42 = vpack.c.bf16 %v844_v38, %v843_v28  ;;  %v1444_v43 = vpack.c.bf16 %v810_v39, %v809_v29  ;;  %v842_v44 = vsel %vm714_vm8, %v630_v26, %v778_v34 }
 0x123   :  { %1553 = vst [vmem:[#allocation2 + $0x68] sm:$0xff] %v1449_v37   ;;  %v1524_v45 = vpack.c.bf16 %v842_v44, %v841_v41  ;;  %vm687_vm9 = vcmp.ge.f32.partialorder %v523_v36, 0.0  ;;  %v751_v46 = vmul.f32 0.1, %v523_v36  ;;  %v783_v47 = vmul.f32 0.1, %v651_v40 }
 0x124   :  { %1569 = vst [vmem:[#allocation2 + $0xe8] sm:$0xff] %v1529_v42   ;;  %1552 = vst [vmem:[#allocation2 + $0x60] sm:$0xff] %v1444_v43   ;;  %v515_v48 = vadd.f32 %v1908_v35, %v514_v13  ;;  %v643_v49 = vadd.f32 %v1908_v35, %v642_v14  ;;  %v526_v50 = vadd.f32 %v1644_v17, %v1908_v35  ;;  %vm719_vm10 = vcmp.ge.f32.partialorder %v651_v40, 0.0 }
 0x125   :  { %v654_v51 = vadd.f32 %v1676_v18, %v1908_v35  ;;  %1568 = vst [vmem:[#allocation2 + $0xe0] sm:$0xff] %v1524_v45   ;;  %v518_v52 = vadd.f32 %v1908_v35, %v517_v22  ;;  %v646_v53 = vadd.f32 %v1908_v35, %v645_v27  ;;  %v815_v54 = vsel %vm687_vm9, %v523_v36, %v751_v46 }
 0x126   :  { %vm685_vm11 = vcmp.ge.f32.partialorder %v515_v48, 0.0  ;;  %v749_v55 = vmul.f32 0.1, %v515_v48  ;;  %v781_v56 = vmul.f32 0.1, %v643_v49  ;;  %vm688_vm12 = vcmp.ge.f32.partialorder %v526_v50, 0.0 }
 0x127   :  { %v752_v57 = vmul.f32 0.1, %v526_v50  ;;  %vm720_vm13 = vcmp.ge.f32.partialorder %v654_v51, 0.0  ;;  %v784_v58 = vmul.f32 0.1, %v654_v51  ;;  %v847_v59 = vsel %vm719_vm10, %v651_v40, %v783_v47 }
 0x128   :  { %vm717_vm14 = vcmp.ge.f32.partialorder %v643_v49, 0.0  ;;  %vm686_vm15 = vcmp.ge.f32.partialorder %v518_v52, 0.0  ;;  %v750_v60 = vmul.f32 0.1, %v518_v52  ;;  %vm718_vm0 = vcmp.ge.f32.partialorder %v646_v53, 0.0 }
 0x129   :  { %v816_v61 = vsel %vm688_vm12, %v526_v50, %v752_v57  ;;  %v848_v62 = vsel %vm720_vm13, %v654_v51, %v784_v58  ;;  %v782_v63 = vmul.f32 0.1, %v646_v53  ;;  %v813_v35 = vsel %vm685_vm11, %v515_v48, %v749_v55 }
 0x12a   :  { %v1459_v0 = vpack.c.bf16 %v816_v61, %v815_v54  ;;  %v1539_v1 = vpack.c.bf16 %v848_v62, %v847_v59  ;;  %v814_v2 = vsel %vm686_vm15, %v518_v52, %v750_v60  ;;  %v845_v3 = vsel %vm717_vm14, %v643_v49, %v781_v56 }
 0x12b   :  { %v1454_v4 = vpack.c.bf16 %v814_v2, %v813_v35  ;;  %v846_v5 = vsel %vm718_vm0, %v646_v53, %v782_v63 }
 0x12c   :  { %1555 = vst [vmem:[#allocation2 + $0x78] sm:$0xff] %v1459_v0   ;;  %1571 = vst [vmem:[#allocation2 + $0xf8] sm:$0xff] %v1539_v1   ;;  %v1534_v6 = vpack.c.bf16 %v846_v5, %v845_v3 }
 0x12d   :  { %1554 = vst [vmem:[#allocation2 + $0x70] sm:$0xff] %v1454_v4  }
 0x12e   :  { %1570 = vst [vmem:[#allocation2 + $0xf0] sm:$0xff] %v1534_v6  }
 0x12f   :  { %1732 = shalt.err (!%p1729_p4)
}
 0x130   :  { %s1733_s30 = scalar_lea.hbm %s1999_s3, 4096 }
 0x131   :  { %p1734_p5 = scmp.ne.s32.totalorder %s1999_s3, %s1733_s30  ;;  %p1737_p6 = scmp.lt.u32.totalorder %s1733_s30, %s1999_s3 }
 0x133   :  { %p1739_p7 = pnand %p1737_p6, %p1734_p5 }
 0x135   :  { %1742 = shalt.err (!%p1739_p7)
}
 0x136   :  { %s1746_s8 = smov 64   ;;  %s1747_s9 = smov 4  }
 0x137   :  { %1180 = dma.vmem_to_hbm [thread:$0]  %s1175_s2, 4096, %s1999_s3, [#allocation3], %s1746_s8, %s1746_s8, %s1747_s9  }
 0x138   :  { %1743 = dma.done.wait [#allocation3], 4096  }
 0x139   :  { %1744 = vsyncadd [#allocation3], 4294963200 }
 0x13a   :  { %1184 = vsyncpa [#allocation3], 1 }

</bundles_post_ra>
